<compile_context>
chip_gen: v7x
topology: tpu7x:2x2x1
jax: 0.10.0
libtpu: 0.0.40
codegen_flags: <defaults>
</compile_context>

<pallas_src>
import functools
import math

import jax
import jax.numpy as jnp
from jax.experimental import pallas as pl
from jax.experimental.pallas import tpu as pltpu

CTC_LOSS_THRESHOLD = 10000.0


def _round_up(x, m):
    return ((x + m - 1) // m) * m


def _head_kernel(scal_ref, x_ref, lab_ref, w_hbm, out_ref,
                 w_vmem, w_sem, acc_ce, acc_ok,
                 *, vocab, inv_n, compute_acc, combine):
    """One row-tile step of a single softmax cross-entropy head.

    acc_ce / acc_ok are per-row VMEM vector accumulators (no per-step scalar
    crossings); the cross-lane reduction, mean, and (for the attention call)
    the alpha-weighted combine happen once under pl.when(last step).
    """
    step = pl.program_id(0)

    @pl.when(step == 0)
    def _():
        # Weight stays resident for the whole call: single-buffered manual DMA
        # (a BlockSpec input would be double-buffered even with a constant
        # index_map, doubling the VMEM footprint).
        cp = pltpu.make_async_copy(w_hbm, w_vmem, w_sem)
        cp.start()
        cp.wait()
        acc_ce[...] = jnp.zeros_like(acc_ce)
        acc_ok[...] = jnp.zeros_like(acc_ok)

    # bf16 inputs -> f32 accumulation on the MXU; only this head's logits.
    logits = jnp.dot(x_ref[...], w_vmem[...], preferred_element_type=jnp.float32)
    rt, vp = logits.shape

    lab = lab_ref[...]                                   # (rt, 1); -1 == padded row
    col = jax.lax.broadcasted_iota(jnp.int32, (rt, vp), 1)

    neg_big = jnp.float32(-1e30)                         # finite: keeps pad rows NaN-free
    masked = jnp.where(col < vocab, logits, neg_big) if vp != vocab else logits

    # numerically stable per-row logsumexp over the real vocab columns
    m = jnp.max(masked, axis=-1, keepdims=True)
    lse = m + jnp.log(jnp.sum(jnp.exp(masked - m), axis=-1, keepdims=True))
    lab_logit = jnp.sum(jnp.where(col == lab, logits, 0.0), axis=-1, keepdims=True)
    valid = (lab >= 0).astype(jnp.float32)               # mask padded rows
    acc_ce[...] += (lse - lab_logit) * valid

    if compute_acc:
        # argmax as min index among maximal entries (matches first-max argmax)
        is_max = masked >= m
        pred = jnp.min(jnp.where(is_max, col, vp), axis=-1, keepdims=True)
        acc_ok[...] += (pred == lab).astype(jnp.float32) * valid

    @pl.when(step == pl.num_programs(0) - 1)
    def _():
        mean_ce = jnp.sum(acc_ce[...]) * inv_n
        acc_val = jnp.sum(acc_ok[...]) * inv_n
        if combine:
            alpha = scal_ref[0]
            loss_ctc = scal_ref[1]
            # the actual `Loss.forward` hot line:
            out_ref[0, 0] = alpha * loss_ctc + (1.0 - alpha) * mean_ce
            out_ref[0, 1] = loss_ctc
            out_ref[0, 2] = mean_ce
            out_ref[0, 3] = acc_val
        else:
            out_ref[0, 0] = mean_ce
            out_ref[0, 1] = acc_val


def _head_call(x, w, y, scal, *, combine, compute_acc, max_row_tile=256):
    """Row-tiled softmax-CE head.  Returns a packed (1, 2) or (1, 4) result."""
    n, d = x.shape
    v = w.shape[1]
    vpad = _round_up(v, 256)                 # lane-dense; 256-granular for v6e/v7x MXU N
    row_tile = min(_round_up(max_row_tile, 8), _round_up(n, 8))
    n_pad = _round_up(n, row_tile)

    xb = x.astype(jnp.bfloat16)
    lab = y.astype(jnp.int32).reshape(-1, 1)
    if n_pad != n:                           # pad only the last partial tile
        xb = jnp.pad(xb, ((0, n_pad - n), (0, 0)))
        lab = jnp.pad(lab, ((0, n_pad - n), (0, 0)), constant_values=-1)
    wb = w.astype(jnp.bfloat16)
    if vpad != v:
        wb = jnp.pad(wb, ((0, 0), (0, vpad - v)))

    n_out = 4 if combine else 2
    kernel = functools.partial(_head_kernel, vocab=v, inv_n=1.0 / n,
                               compute_acc=compute_acc, combine=combine)

    # Explicit VMEM budget: x/lab tiles double-buffered, one resident weight
    # copy, generous room for the f32 softmax temporaries.
    est = (2 * row_tile * d * 2 + 2 * row_tile * 4
           + d * vpad * 2 + 6 * row_tile * vpad * 4 + 4 * row_tile * 4)
    vmem_limit = int(min(64 * 2 ** 20, max(16 * 2 ** 20, 2 * est)))

    smem = pl.BlockSpec(memory_space=pltpu.MemorySpace.SMEM)
    return pl.pallas_call(
        kernel,
        out_shape=jax.ShapeDtypeStruct((1, n_out), jnp.float32),
        grid=(n_pad // row_tile,),
        in_specs=[
            smem,                                            # [alpha, loss_ctc] scalars
            pl.BlockSpec((row_tile, d), lambda i: (i, 0)),   # activations (row-tiled)
            pl.BlockSpec((row_tile, 1), lambda i: (i, 0)),   # labels (-1 marks pad rows)
            pl.BlockSpec(memory_space=pl.ANY),               # weight: raw HBM ref
        ],
        out_specs=smem,                                      # packed scalar results
        scratch_shapes=[
            pltpu.VMEM((d, vpad), jnp.bfloat16),             # resident weight (1 buffer)
            pltpu.SemaphoreType.DMA,                         # weight-copy semaphore
            pltpu.VMEM((row_tile, 1), jnp.float32),          # per-row CE accumulator
            pltpu.VMEM((row_tile, 1), jnp.float32),          # per-row correct accumulator
        ],
        compiler_params=pltpu.CompilerParams(
            dimension_semantics=("arbitrary",),              # row axis feeds accumulators
            vmem_limit_bytes=vmem_limit),
    )(scal, xb, lab, wb)


def loss_forward(alpha, x_enc, w_ctc, y_ctc, dec, w_att, y_att, *, max_row_tile=256):
    """Mirrors Loss.forward. Returns (mtl_loss, loss_ctc, loss_att, acc)."""
    alpha_f = jnp.asarray(alpha, jnp.float32)
    # CTC branch (frame-wise CE stand-in; see TODO): no accuracy, no combine.
    ctc_out = _head_call(x_enc, w_ctc, y_ctc, jnp.zeros((2,), jnp.float32),
                         combine=False, compute_acc=False,
                         max_row_tile=max_row_tile)
    loss_ctc = ctc_out[0, 0]
    # Attention branch: CE + accuracy, alpha-combine finalized inside the kernel.
    scal = jnp.stack([alpha_f, loss_ctc])
    att_out = _head_call(dec, w_att, y_att, scal,
                         combine=True, compute_acc=True,
                         max_row_tile=max_row_tile)
    return att_out[0, 0], att_out[0, 1], att_out[0, 2], att_out[0, 3]


if __name__ == "__main__":
    # Small, deterministic synthetic "predictor" shapes.
    B, T, L = 2, 8, 6       # batch, encoder frames, decoder steps
    D, H, V = 32, 32, 16    # encoder feat, decoder hidden, output vocab
    mtlalpha = 0.3

    key = jax.random.PRNGKey(0)
    k1, k2, k3, k4, k5, k6 = jax.random.split(key, 6)

    # encoder features (CTC branch) and decoder states (attention branch)
    x_enc = jax.random.normal(k1, (B * T, D), jnp.float32)
    dec = jax.random.normal(k2, (B * L, H), jnp.float32)
    # deterministic "parameters" of the synthetic predictor heads
    w_ctc = jax.random.normal(k3, (D, V), jnp.float32) * (1.0 / math.sqrt(D))
    w_att = jax.random.normal(k4, (H, V), jnp.float32) * (1.0 / math.sqrt(H))
    # integer targets, shaped [rows, 1]
    y_ctc = jax.random.randint(k5, (B * T, 1), 0, V, jnp.int32)
    y_att = jax.random.randint(k6, (B * L, 1), 0, V, jnp.int32)

    loss, loss_ctc, loss_att, acc = loss_forward(
        mtlalpha, x_enc, w_ctc, y_ctc, dec, w_att, y_att)
    loss = jax.block_until_ready(loss)

    # reference check in plain JAX (same bf16-input / f32-accumulate math)
    def ref_branch(x, w, lab):
        logits = jnp.dot(x.astype(jnp.bfloat16), w.astype(jnp.bfloat16),
                         preferred_element_type=jnp.float32)
        logp = jax.nn.log_softmax(logits, axis=-1)
        ce = -jnp.take_along_axis(logp, lab, axis=-1)
        correct = (jnp.argmax(logits, axis=-1, keepdims=True) == lab)
        return jnp.mean(ce), jnp.mean(correct.astype(jnp.float32))

    r_ctc, _ = ref_branch(x_enc, w_ctc, y_ctc)
    r_att, r_acc = ref_branch(dec, w_att, y_att)
    r_loss = mtlalpha * r_ctc + (1.0 - mtlalpha) * r_att

    assert jnp.allclose(loss, r_loss, atol=1e-3, rtol=1e-3), (loss, r_loss)
    assert jnp.allclose(loss_ctc, r_ctc, atol=1e-3, rtol=1e-3), (loss_ctc, r_ctc)
    assert jnp.allclose(loss_att, r_att, atol=1e-3, rtol=1e-3), (loss_att, r_att)
    assert jnp.allclose(acc, r_acc, atol=1e-5), (acc, r_acc)

    # mirror the Loss.forward reporting guard (logging side-effect omitted)
    fl = float(loss)
    if fl < CTC_LOSS_THRESHOLD and not math.isnan(fl):
        pass  # Reporter.report(...) would fire here

    print("KERNEL_OK")
</pallas_src>

<mosaic_0001>
module attributes {stable_mosaic.version = 11 : i64} {
  func.func @_head_kernel(%arg0: i32, %arg1: memref<2xf32, #tpu.memory_space<smem>>, %arg2: memref<16x32xbf16, #tpu.memory_space<vmem>>, %arg3: memref<16x1xi32, #tpu.memory_space<vmem>>, %arg4: memref<32x256xbf16, #tpu.memory_space<any>>, %arg5: memref<1x2xf32, #tpu.memory_space<smem>>, %arg6: memref<32x256xbf16, #tpu.memory_space<vmem>>, %arg7: memref<!tpu.dma_semaphore, #tpu.memory_space<semaphore_mem>>, %arg8: memref<16x1xf32, #tpu.memory_space<vmem>>, %arg9: memref<16x1xf32, #tpu.memory_space<vmem>>) attributes {dimension_semantics = [#tpu.dimension_semantics<arbitrary>], iteration_bounds = array<i64: 1>, scalar_prefetch = 0 : i64, scratch_operands = 4 : i64, tpu.core_type = #tpu.core_type<tc>, window_params = [{transform_indices = @transform_0, window_bounds = array<i64: 2>}, {transform_indices = @transform_1, window_bounds = array<i64: 16, 32>}, {transform_indices = @transform_2, window_bounds = array<i64: 16, 1>}, {}, {transform_indices = @transform_4, window_bounds = array<i64: 1, 2>}]} {
    %c0_i32 = arith.constant 0 : i32
    %0 = arith.cmpi eq, %arg0, %c0_i32 : i32
    %1 = arith.extui %0 : i1 to i32
    %c0_i32_0 = arith.constant 0 : i32
    %2 = arith.cmpi ne, %1, %c0_i32_0 : i32
    scf.if %2 {
      tpu.enqueue_dma source(%arg4 : memref<32x256xbf16, #tpu.memory_space<any>>) target(%arg6 : memref<32x256xbf16, #tpu.memory_space<vmem>>) target_semaphore(%arg7 : memref<!tpu.dma_semaphore, #tpu.memory_space<semaphore_mem>>)
      tpu.wait_dma2 semaphore(%arg7 : memref<!tpu.dma_semaphore, #tpu.memory_space<semaphore_mem>>) src(%arg4 : memref<32x256xbf16, #tpu.memory_space<any>>) dst(%arg6 : memref<32x256xbf16, #tpu.memory_space<vmem>>)
      %cst_18 = arith.constant 0.000000e+00 : f32
      %39 = vector.broadcast %cst_18 : f32 to vector<16x1xf32>
      %c0_19 = arith.constant 0 : index
      %c0_20 = arith.constant 0 : index
      %40 = vector.load %arg8[%c0_19, %c0_20] : memref<16x1xf32, #tpu.memory_space<vmem>>, vector<16x1xf32>
      tpu.vector_store %arg8[%c0_19, %c0_20], %39 {strides = array<i32>} : memref<16x1xf32, #tpu.memory_space<vmem>>, vector<16x1xf32>,
      %cst_21 = arith.constant 0.000000e+00 : f32
      %41 = vector.broadcast %cst_21 : f32 to vector<16x1xf32>
      %c0_22 = arith.constant 0 : index
      %c0_23 = arith.constant 0 : index
      %42 = vector.load %arg9[%c0_22, %c0_23] : memref<16x1xf32, #tpu.memory_space<vmem>>, vector<16x1xf32>
      tpu.vector_store %arg9[%c0_22, %c0_23], %41 {strides = array<i32>} : memref<16x1xf32, #tpu.memory_space<vmem>>, vector<16x1xf32>,
    } else {
    }
    %c0 = arith.constant 0 : index
    %c0_1 = arith.constant 0 : index
    %3 = vector.load %arg2[%c0, %c0_1] : memref<16x32xbf16, #tpu.memory_space<vmem>>, vector<16x32xbf16>
    %c0_2 = arith.constant 0 : index
    %c0_3 = arith.constant 0 : index
    %4 = vector.load %arg6[%c0_2, %c0_3] : memref<32x256xbf16, #tpu.memory_space<vmem>>, vector<32x256xbf16>
    %cst = arith.constant dense<0.000000e+00> : vector<16x256xf32>
    %5 = tpu.matmul %3, %4, %cst {dimension_numbers = #tpu.dot_dimension_numbers<[1], [0], [0], [1], [0, 0, 1, 1], [], []>} : vector<16x32xbf16>, vector<32x256xbf16>, vector<16x256xf32> -> vector<16x256xf32>
    %c0_4 = arith.constant 0 : index
    %c0_5 = arith.constant 0 : index
    %6 = vector.load %arg3[%c0_4, %c0_5] : memref<16x1xi32, #tpu.memory_space<vmem>>, vector<16x1xi32>
    %7 = tpu.iota {dimensions = array<i32: 1>} : vector<16x256xi32>
    %c16_i32 = arith.constant 16 : i32
    %8 = vector.broadcast %c16_i32 : i32 to vector<16x256xi32>
    %9 = arith.cmpi slt, %7, %8 : vector<16x256xi32>
    %cst_6 = arith.constant -1.000000e+30 : f32
    %10 = vector.broadcast %cst_6 : f32 to vector<16x256xf32>
    %11 = arith.select %9, %5, %10 : vector<16x256xi1>, vector<16x256xf32>
    %cst_7 = arith.constant dense<0xFF800000> : vector<16xf32>
    %12 = vector.multi_reduction <maximumf>, %11, %cst_7 [1] : vector<16x256xf32> to vector<16xf32>
    %13 = vector.shape_cast %12 : vector<16xf32> to vector<16x1xf32>
    %14 = vector.broadcast %13 : vector<16x1xf32> to vector<16x256xf32>
    %15 = arith.subf %11, %14 : vector<16x256xf32>
    %16 = math.exp %15 : vector<16x256xf32>
    %cst_8 = arith.constant dense<0.000000e+00> : vector<16xf32>
    %17 = vector.multi_reduction <add>, %16, %cst_8 [1] : vector<16x256xf32> to vector<16xf32>
    %18 = vector.shape_cast %17 : vector<16xf32> to vector<16x1xf32>
    %19 = math.log %18 : vector<16x1xf32>
    %20 = arith.addf %13, %19 : vector<16x1xf32>
    %21 = vector.broadcast %6 : vector<16x1xi32> to vector<16x256xi32>
    %22 = arith.cmpi eq, %7, %21 : vector<16x256xi32>
    %cst_9 = arith.constant 0.000000e+00 : f32
    %23 = vector.broadcast %cst_9 : f32 to vector<16x256xf32>
    %24 = arith.select %22, %5, %23 : vector<16x256xi1>, vector<16x256xf32>
    %cst_10 = arith.constant dense<0.000000e+00> : vector<16xf32>
    %25 = vector.multi_reduction <add>, %24, %cst_10 [1] : vector<16x256xf32> to vector<16xf32>
    %26 = vector.shape_cast %25 : vector<16xf32> to vector<16x1xf32>
    %c0_i32_11 = arith.constant 0 : i32
    %27 = vector.broadcast %c0_i32_11 : i32 to vector<16x1xi32>
    %28 = arith.cmpi sge, %6, %27 : vector<16x1xi32>
    %29 = arith.extui %28 : vector<16x1xi1> to vector<16x1xi32>
    %30 = arith.sitofp %29 : vector<16x1xi32> to vector<16x1xf32>
    %c0_12 = arith.constant 0 : index
    %c0_13 = arith.constant 0 : index
    %31 = vector.load %arg8[%c0_12, %c0_13] : memref<16x1xf32, #tpu.memory_space<vmem>>, vector<16x1xf32>
    %32 = arith.subf %20, %26 : vector<16x1xf32>
    %33 = arith.mulf %32, %30 : vector<16x1xf32>
    %34 = arith.addf %31, %33 : vector<16x1xf32>
    %c0_14 = arith.constant 0 : index
    %c0_15 = arith.constant 0 : index
    %35 = vector.load %arg8[%c0_14, %c0_15] : memref<16x1xf32, #tpu.memory_space<vmem>>, vector<16x1xf32>
    tpu.vector_store %arg8[%c0_14, %c0_15], %34 {strides = array<i32>} : memref<16x1xf32, #tpu.memory_space<vmem>>, vector<16x1xf32>,
    %c0_i32_16 = arith.constant 0 : i32
    %36 = arith.cmpi eq, %arg0, %c0_i32_16 : i32
    %37 = arith.extui %36 : i1 to i32
    %c0_i32_17 = arith.constant 0 : i32
    %38 = arith.cmpi ne, %37, %c0_i32_17 : i32
    scf.if %38 {
      %c0_18 = arith.constant 0 : index
      %c0_19 = arith.constant 0 : index
      %39 = vector.load %arg8[%c0_18, %c0_19] : memref<16x1xf32, #tpu.memory_space<vmem>>, vector<16x1xf32>
      %40 = vector.shape_cast %39 : vector<16x1xf32> to vector<1x16x1xf32>
      %cst_20 = arith.constant dense<0.000000e+00> : vector<1xf32>
      %41 = vector.multi_reduction <add>, %40, %cst_20 [1, 2] : vector<1x16x1xf32> to vector<1xf32>
      %42 = vector.shape_cast %41 : vector<1xf32> to vector<1x1x1xf32>
      %43 = vector.extract %42[0, 0, 0] : f32 from vector<1x1x1xf32>
      %cst_21 = arith.constant 6.250000e-02 : f32
      %44 = arith.mulf %43, %cst_21 : f32
      %c0_22 = arith.constant 0 : index
      %c0_23 = arith.constant 0 : index
      %45 = vector.load %arg9[%c0_22, %c0_23] : memref<16x1xf32, #tpu.memory_space<vmem>>, vector<16x1xf32>
      %46 = vector.shape_cast %45 : vector<16x1xf32> to vector<1x16x1xf32>
      %cst_24 = arith.constant dense<0.000000e+00> : vector<1xf32>
      %47 = vector.multi_reduction <add>, %46, %cst_24 [1, 2] : vector<1x16x1xf32> to vector<1xf32>
      %48 = vector.shape_cast %47 : vector<1xf32> to vector<1x1x1xf32>
      %49 = vector.extract %48[0, 0, 0] : f32 from vector<1x1x1xf32>
      %cst_25 = arith.constant 6.250000e-02 : f32
      %50 = arith.mulf %49, %cst_25 : f32
      %c0_26 = arith.constant 0 : index
      %c0_27 = arith.constant 0 : index
      %51 = memref.load %arg5[%c0_26, %c0_27] : memref<1x2xf32, #tpu.memory_space<smem>>
      memref.store %44, %arg5[%c0_26, %c0_27] : memref<1x2xf32, #tpu.memory_space<smem>>
      %c0_28 = arith.constant 0 : index
      %c1 = arith.constant 1 : index
      %52 = memref.load %arg5[%c0_28, %c1] : memref<1x2xf32, #tpu.memory_space<smem>>
      memref.store %50, %arg5[%c0_28, %c1] : memref<1x2xf32, #tpu.memory_space<smem>>
    } else {
    }
    return
  }
  func.func @transform_0(%arg0: i32) -> i32 {
    %c0_i32 = arith.constant 0 : i32
    %c0_i32_0 = arith.constant 0 : i32
    return %c0_i32 : i32
  }
  func.func @transform_1(%arg0: i32) -> (i32, i32) {
    %c0_i32 = arith.constant 0 : i32
    %c0_i32_0 = arith.constant 0 : i32
    return %arg0, %c0_i32 : i32, i32
  }
  func.func @transform_2(%arg0: i32) -> (i32, i32) {
    %c0_i32 = arith.constant 0 : i32
    %c0_i32_0 = arith.constant 0 : i32
    return %arg0, %c0_i32 : i32, i32
  }
  func.func @transform_4(%arg0: i32) -> (i32, i32) {
    %c0_i32 = arith.constant 0 : i32
    %c0_i32_0 = arith.constant 0 : i32
    %c0_i32_1 = arith.constant 0 : i32
    return %c0_i32, %c0_i32_0 : i32, i32
  }
}

</mosaic_0001>

<bundles_post_ra>
// kernel: tpu_custom_call.1
= control target key start
LH: loop header
LB: loop body
LE: loop exit
PB: predicated region body
PF: predicated region fallthrough
CT: control target
= control target key end

     0   :  { %9 = vsyncpa [#allocation8], 0  ;;  %s421_s0 = inlined_call_operand.vmem [shape: f32[2], index: 0, kind: input, shape index: {}]   ;;  %s422_s1 = inlined_call_operand.vmem [shape: bf16[16,32], index: 1, kind: input, shape index: {}]   ;;  %s423_s2 = inlined_call_operand.vmem [shape: s32[16,1], index: 2, kind: input, shape index: {}]   ;;  %s424_s3 = inlined_call_operand.hbm [shape: bf16[32,256], index: 3, kind: input, shape index: {}]   ;;  %s425_s4 = inlined_call_operand.hbm [shape: f32[1,2], index: 4, kind: output, shape index: {}]  }
   0x1   :  { %10 = vsyncpa [#allocation7], 0  ;;  %s17_s17 = sshll.u32 %s421_s0, 4  ;;  %s18_s17 = int_to_ptr.vmem [resolvable:$true] %s17_s17 }
   0x2   :  { %s310_s18 = scalar_lea.vmem %s18_s17, 16  ;;  %p315_p1 = scmp.lt.s32.totalorder %s18_s17, %s18_s17 }
   0x3   :  { %p311_p0 = scmp.ne.s32.totalorder %s18_s17, %s310_s18  ;;  %p316_p2 = scmp.lt.s32.totalorder %s310_s18, %s310_s18 }
   0x5   :  { %p317_p3 = por %p316_p2, %p315_p1 }
   0x7   :  { %p318_p4 = pnand %p317_p3, %p311_p0 }
   0x9   :  { %321 = shalt.err (!%p318_p4)
}
   0xa   :  { %s338_s19 = smov [#allocation6]  }
   0xb   :  { %20 = dma.vmem_to_smem %s18_s17, 16, %s338_s19, [#allocation8]  }
   0xc   :  { %332 = dma.done.wait [#allocation8], 16  }
   0xd   :  { %333 = vsyncadd [#allocation8], 4294967280 }
   0xe   :  { %28 = sfence }
   0xf   :  { %s38_s20 = sld [smem:[#allocation0]]   ;;  %s339_s21 = smov [#allocation2]  }
  0x10   :  { %s46_s22 = sshll.u32 %s339_s21, 4  ;;  %s340_s23 = smov 256   ;;  %s47_s22 = int_to_ptr.vmem [resolvable:$true] %s46_s22 }
  0x11   :  { %50 = sst [smem:[#allocation11]] %s340_s23  ;;  %s341_s0 = smov 2  }
  0x12   :  { %52 = sst [smem:[#allocation11 + $0x1]] %s340_s23  ;;  %s342_s24 = smov 64  }
  0x13   :  { %54 = sst [smem:[#allocation11 + $0x2]] %s341_s0  ;;  %s343_s26 = smov 128  }
  0x14   :  { %56 = sst [smem:[#allocation11 + $0x3]] %s342_s24  ;;  %s344_s28 = smov 4  }
  0x15   :  { %s271_s25 = sshll.u32 %s38_s20, 26  ;;  %58 = sst [smem:[#allocation11 + $0x4]] %s343_s26 }
  0x16   :  { %s272_s27 = sadd.s32 134217728, %s271_s25  ;;  %60 = sst [smem:[#allocation11 + $0x5]] %s341_s0 }
  0x17   :  { %62 = sst [smem:[#allocation11 + $0x6]] %s343_s26  ;;  %s345_s29 = smov [#allocation3]  }
  0x18   :  { %64 = sst [smem:[#allocation11 + $0x7]] %s342_s24  ;;  %s346_s30 = smov [#allocation10]  }
  0x19   :  { %66 = sst [smem:[#allocation11 + $0x8]] %s344_s28 }
  0x1a   :  { %68 = dma.general %s424_s3, 512, %s47_s22, %s345_s29, %s346_s30, [#allocation11], %s272_s27, 0  }
  0x1b   :  { %334 = dma.done.wait [#allocation3], 512 }
  0x1c   :  { %335 = vsyncadd [#allocation3], 4294966784  ;;  %vm73_vm0 = vcmask 7168   ;;  %v347_v0 = vmov 0.0   ;;  %v81_v1 = vld [vmem:[#allocation2 + $0x8] sm:$0xff]  ;;  %v80_v2 = vld [vmem:[#allocation2] sm:$0xff]  ;;  %v138_v9 = vlaneseq }
  0x1d   :  { %74 = vst.msk [vmem:[#allocation4] sm:$0xff] %vm73_vm0, %v347_v0  ;;  %75 = vst.msk [vmem:[#allocation4 + $0x8] sm:$0xff] %vm73_vm0, %v347_v0  ;;  %v83_v3 = vld [vmem:[#allocation2 + $0x18] sm:$0xff]  ;;  %93 = vmatprep.subr.bf16.mxu0 %v81_v1  ;;  %v348_v4 = vmov 0   ;;  %v389_v5 = vld [vmem:[%s423_s2] sm:$0xff]  ;;  %vm89_vm1 = vcmask 261120  }
  0x1e   :  { %76 = vst.msk [vmem:[#allocation5] sm:$0xff] %vm73_vm0, %v347_v0  ;;  %77 = vst.msk [vmem:[#allocation5 + $0x8] sm:$0xff] %vm73_vm0, %v347_v0  ;;  %125 = vmatprep.mubr.bf16.mxu0 %v348_v4  ;;  %94 = vmatpush1.bf16.msra.mxu0 %v80_v2  ;;  %v82_v6 = vld [vmem:[#allocation2 + $0x10] sm:$0xff]  ;;  %v395_v7 = vld [vmem:[%s423_s2 + $0x8] sm:$0xff]  ;;  %v139_v10 = vand.u32 127, %v138_v9  ;;  %vm197_vm7 = vcmp.ge.s32.totalorder %v389_v5, 0 }
  0x1f   :  { %295 = vset.pattern.permute.xlu1 %v348_v4  ;;  %95 = vmatprep.subr.bf16.mxu0 %v83_v3  ;;  %v297_v8 = vld [vmem:[%s422_s1] sm:$0xff]   ;;  %v349_v51 = vmov 0.0   ;;  %vm198_vm8 = vcmp.ge.s32.totalorder %v395_v7, 0  ;;  %s322_s16 = scalar_lea.hbm %s425_s4, 16 }
  0x20   :  { %178 = vperm.xlu1 %295, %v389_v5   ;;  %296 = vset.pattern.permute.xlu0 %v348_v4  ;;  %v140_v12 = vadd.s32 128, %v139_v10  ;;  %vm141_vm3 = vcmp.lt.s32.totalorder %v139_v10, 16  ;;  %v275_v52 = vsel %vm197_vm7, 1.0, %v349_v51  ;;  %v276_v58 = vsel %vm198_vm8, 1.0, %v349_v51  ;;  %p323_p5 = scmp.ne.s32.totalorder %s425_s4, %s322_s16  ;;  %p326_p6 = scmp.lt.u32.totalorder %s322_s16, %s425_s4 }
  0x22   :  { %96 = vmatpush1.bf16.msra.mxu0 %v82_v6  ;;  %p328_p7 = pnand %p326_p6, %p323_p5 }
  0x24   :  { %181 = vperm.xlu1 %295, %v395_v7   ;;  %v203_v55 = vld [vmem:[#allocation4] sm:$0xff]  ;;  %v204_v62 = vld [vmem:[#allocation4 + $0x8] sm:$0xff] }
  0x25   :  { %274 = vmatmul.mubr.msk.bf16.vlgmr.msra.gmra.mrb[0].mxu0 %vm89_vm1, %v297_v8  ;;  %v232_v2 = vld [vmem:[#allocation5] sm:$0xff]  ;;  %v233_v3 = vld [vmem:[#allocation5 + $0x8] sm:$0xff] }
  0x26   :  { %v234_v7 = vsel %vm73_vm0, %v232_v2, 0.0  ;;  %v235_v8 = vsel %vm73_vm0, %v233_v3, 0.0 }
  0x9f   :  { %v179_v11 = vpop.permute.xlu1 %178 }
  0xa0   :  { %vm183_vm2 = vcmp.eq.s32.totalorder %v139_v10, %v179_v11  ;;  %vm184_vm4 = vcmp.eq.s32.totalorder %v140_v12, %v179_v11 }
  0xa3   :  { %v182_v13 = vpop.permute.xlu1 %181 }
  0xa4   :  { %vm185_vm5 = vcmp.eq.s32.totalorder %v139_v10, %v182_v13  ;;  %vm186_vm6 = vcmp.eq.s32.totalorder %v140_v12, %v182_v13  ;;  %v236_v10 = vadd.f32 %v235_v8, %v234_v7 }
  0xf8   :  { %v127_v14 = vpop.f32.mrb[0].mxu0 }
  0xf9   :  { %v187_v15 = vsel %vm183_vm2, %v127_v14, 0.0  ;;  %v129_v16 = vpop.f32.mrb[1].mxu0  ;;  %v143_v17 = vsel %vm141_vm3, %v127_v14, -1e+30 }
  0xfa   :  { %v188_v18 = vsel %vm184_vm4, %v129_v16, 0.0  ;;  %v131_v19 = vpop.f32.mrb[2].mxu0  ;;  %v147_v20 = vmax.f32 %v143_v17, -1e+30 }
  0xfb   :  { %v145_v21 = vsel %vm141_vm3, %v131_v19, -1e+30  ;;  %v189_v22 = vsel %vm185_vm5, %v131_v19, 0.0  ;;  %v133_v23 = vpop.f32.mrb[3].mxu0  ;;  %v191_v24 = vadd.f32 %v188_v18, %v187_v15 }
  0xfc   :  { %v190_v25 = vsel %vm186_vm6, %v133_v23, 0.0  ;;  %148 = vmax.xlane.f32.xlu0 %v147_v20  ;;  %v150_v27 = vmax.f32 %v145_v21, -1e+30 }
  0xfd   :  { %v194_v26 = vadd.f32 %v190_v25, %v189_v22 }
 0x100   :  { %151 = vmax.xlane.f32.xlu0 %v150_v27 }
 0x189   :  { %v149_v28 = vpop.xlane.xlu0 %148 }
 0x18a   :  { %v153_v29 = vsub.f32 %v143_v17, %v149_v28  ;;  %v154_v30 = vsub.f32 -1e+30, %v149_v28 }
 0x18c   :  { %v157_v31 = vmul.f32 1.442695, %v153_v29  ;;  %v159_v32 = vmul.f32 1.442695, %v154_v30 }
 0x18d   :  { %v152_v33 = vpop.xlane.xlu0 %151 }
 0x18e   :  { %298 = vpow2.f32 %v157_v31  ;;  %v155_v34 = vsub.f32 %v145_v21, %v152_v33  ;;  %v156_v35 = vsub.f32 -1e+30, %v152_v33 }
 0x18f   :  { %300 = vpow2.f32 %v159_v32 }
 0x190   :  { %v161_v36 = vmul.f32 1.442695, %v155_v34  ;;  %v163_v37 = vmul.f32 1.442695, %v156_v35 }
 0x192   :  { %302 = vpow2.f32 %v161_v36 }
 0x193   :  { %304 = vpow2.f32 %v163_v37 }
 0x198   :  { %v299_v38 = vpop.eup %298 }
 0x199   :  { %v301_v39 = vpop.eup %300 }
 0x19a   :  { %v165_v40 = vadd.f32 %v301_v39, %v299_v38 }
 0x19c   :  { %v303_v41 = vpop.eup %302  ;;  %166 = vadd.xlane.f32.xlu0 %v165_v40 }
 0x19d   :  { %v305_v42 = vpop.eup %304 }
 0x19e   :  { %v168_v43 = vadd.f32 %v305_v42, %v303_v41 }
 0x1a0   :  { %192 = vadd.xlane.f32.xlu0 %v191_v24  ;;  %169 = vadd.xlane.f32.xlu1 %v168_v43 }
 0x1a4   :  { %195 = vadd.xlane.f32.xlu0 %v194_v26 }
 0x229   :  { %v167_v44 = vpop.xlane.xlu0 %166 }
 0x22a   :  { %306 = vlog2.f32 %v167_v44 }
 0x22d   :  { %v170_v45 = vpop.xlane.xlu1 %169  ;;  %v193_v48 = vpop.xlane.xlu0 %192 }
 0x22e   :  { %308 = vlog2.f32 %v170_v45 }
 0x231   :  { %v196_v59 = vpop.xlane.xlu0 %195 }
 0x234   :  { %v307_v46 = vpop.eup %306 }
 0x235   :  { %v172_v47 = vmul.f32 0.6931472, %v307_v46 }
 0x237   :  { %v175_v49 = vadd.f32 %v172_v47, %v149_v28 }
 0x238   :  { %v309_v50 = vpop.eup %308 }
 0x239   :  { %v174_v53 = vmul.f32 0.6931472, %v309_v50  ;;  %v205_v54 = vsub.f32 %v175_v49, %v193_v48 }
 0x23b   :  { %v207_v56 = vmul.f32 %v275_v52, %v205_v54  ;;  %v176_v57 = vadd.f32 %v174_v53, %v152_v33 }
 0x23d   :  { %v209_v60 = vadd.f32 %v207_v56, %v203_v55  ;;  %v206_v61 = vsub.f32 %v176_v57, %v196_v59 }
 0x23f   :  { %212 = vst.msk [vmem:[#allocation4] sm:$0xff] %vm73_vm0, %v209_v60  ;;  %v208_v63 = vmul.f32 %v276_v58, %v206_v61 }
 0x241   :  { %v210_v0 = vadd.f32 %v208_v63, %v204_v62 }
 0x243   :  { %213 = vst.msk [vmem:[#allocation4 + $0x8] sm:$0xff] %vm73_vm0, %v210_v0 }
 0x246   :  { %v217_v1 = vld [vmem:[#allocation4] sm:$0xff] }
 0x247   :  { %v219_v5 = vsel %vm73_vm0, %v217_v1, 0.0 }
 0x24a   :  { %v218_v4 = vld [vmem:[#allocation4 + $0x8] sm:$0xff] }
 0x24b   :  { %v220_v6 = vsel %vm73_vm0, %v218_v4, 0.0 }
 0x24c   :  { %v221_v9 = vadd.f32 %v220_v6, %v219_v5 }
 0x24e   :  { %222 = vadd.xlane.f32.xlu0 %v221_v9 }
 0x252   :  { %237 = vadd.xlane.f32.xlu0 %v236_v10 }
 0x2db   :  { %v223_v11 = vpop.xlane.xlu0 %222 }
 0x2dc   :  { %v224_v12 = vrot.slane %v223_v11, 4 }
 0x2de   :  { %v225_v13 = vadd.f32 %v224_v12, %v223_v11 }
 0x2df   :  { %v238_v14 = vpop.xlane.xlu0 %237 }
 0x2e0   :  { %v226_v15 = vrot.slane %v225_v13, 2  ;;  %v239_v16 = vrot.slane %v238_v14, 4 }
 0x2e2   :  { %v240_v17 = vadd.f32 %v239_v16, %v238_v14  ;;  %v227_v18 = vadd.f32 %v226_v15, %v225_v13 }
 0x2e4   :  { %v241_v19 = vrot.slane %v240_v17, 2  ;;  %v228_v20 = vrot.slane %v227_v18, 1 }
 0x2e6   :  { %v242_v21 = vadd.f32 %v241_v19, %v240_v17  ;;  %v229_v22 = vadd.f32 %v228_v20, %v227_v18 }
 0x2e8   :  { %278 = vpush %v229_v22  ;;  %v243_v23 = vrot.slane %v242_v21, 1 }
 0x2ea   :  { %v244_v24 = vadd.f32 %v243_v23, %v242_v21 }
 0x2ec   :  { %280 = vpush %v244_v24 }
 0x319   :  { %s279_s1 = spop %278 }
 0x31a   :  { %s231_s2 = smul.f32 0.0625, %s279_s1 }
 0x31c   :  { %248 = sst [smem:[#allocation9]] %s231_s2 }
 0x31d   :  { %s281_s12 = spop %280 }
 0x31e   :  { %s246_s13 = smul.f32 0.0625, %s281_s12 }
 0x320   :  { %250 = sst [smem:[#allocation9 + $0x1]] %s246_s13 }
 0x321   :  { %331 = shalt.err (!%p328_p7)
}
 0x322   :  { %s350_s21 = smov [#allocation9]  }
 0x323   :  { %258 = dma.smem_to_hbm %s350_s21, 16, %s425_s4, [#allocation7]  }
 0x324   :  { %336 = dma.done.wait [#allocation7], 16  }
 0x325   :  { %337 = vsyncadd [#allocation7], 4294967280 }
 0x326   :  { %262 = sfence }
 0x327   :  { %263 = vsyncpa [#allocation7], 1 }
 0x328   :  { %264 = vsyncpa [#allocation8], 1 }
 0x329   :  { %265 = vsyncmov [#allocation3] }
 0x32c   :  { %s266_s0 = vpop.sfrf %265 }
 0x32d   :  { %p277_p8 = scmp.ne.s32.totalorder %s266_s0, 0 }
 0x32f   :  { %270 = shalt.err (%p277_p8)  }

</bundles_post_ra>
